<compile_context>
chip_gen: v7x
topology: tpu7x:2x2x1
jax: 0.10.0
libtpu: 0.0.40
codegen_flags: <defaults>
</compile_context>

<pallas_src>
import jax
import jax.numpy as jnp
from jax import lax
from jax.experimental import pallas as pl
from jax.experimental.pallas import tpu as pltpu

# TODO(synk): set to len(EconomyStrategy) / len(ArmyStrategy) of the real bot
# (the enum definitions are not part of the provided snippet).  The kernel is
# written generically in N_ECON / N_ARMY (no hard-coded pad widths).
N_ECON = 2
N_ARMY = 2

IN_DIM = 5 + 12          # 17
HIDDEN = 64
LN_EPS = 1e-5

HEAD_RAW = 1 + N_ECON + N_ARMY       # value | econ logits | army logits
OUT_RAW = 1 + N_ECON * N_ARMY        # value | joint logp

TB_MAX = 2048            # max lanes (batch rows) per grid step
MIN_STEPS = 4            # keep >= 4 grid steps when the batch allows it


def _round_up(n, m):
    return ((n + m - 1) // m) * m


def _pick_tb(B):
    """Lane-tile size: multiple of 128, grows only while >= MIN_STEPS grid
    steps remain (pipeline amortization + v7x dual-TC sharding)."""
    b_lane = _round_up(max(B, 1), 128)
    tb = 128
    while tb * 2 <= TB_MAX and b_lane >= tb * 2 * MIN_STEPS:
        tb *= 2
    return tb


def _layernorm_fm(h, gamma, beta, ones_row):
    """LayerNorm over the feature (sublane) axis of a feature-major (H, TB)
    tile.  Reductions go through the MXU (ones(1,H) @ h) instead of the XLU."""
    mean = jnp.dot(ones_row, h, preferred_element_type=jnp.float32) * (1.0 / HIDDEN)
    c = h - mean                                           # (H, TB) - (1, TB)
    var = jnp.dot(ones_row, c * c, preferred_element_type=jnp.float32) * (1.0 / HIDDEN)
    return c * lax.rsqrt(var + LN_EPS) * gamma + beta      # gamma/beta: (H, 1)


def _log_softmax_ax0(z):
    """log_softmax over the (small) sublane axis of a feature-major tile."""
    m = jnp.max(z, axis=0, keepdims=True)
    s = z - m
    return s - jnp.log(jnp.sum(jnp.exp(s), axis=0, keepdims=True))


def model_kernel(
    x_ref,
    w1_ref, b1_ref, g1_ref, be1_ref,
    w2_ref, b2_ref, g2_ref, be2_ref,
    wh_ref, bh_ref,
    out_ref,
):
    x = x_ref[...]                                            # (IN_DIM, TB)
    ones_row = jnp.ones((1, HIDDEN), jnp.float32)

    # fc1 -> LayerNorm -> ReLU        (all feature-major, batch in lanes)
    h = jnp.dot(w1_ref[...], x, preferred_element_type=jnp.float32) + b1_ref[...]
    h = jnp.maximum(_layernorm_fm(h, g1_ref[...], be1_ref[...], ones_row), 0.0)

    # fc2 -> LayerNorm -> ReLU
    h = jnp.dot(w2_ref[...], h, preferred_element_type=jnp.float32) + b2_ref[...]
    h = jnp.maximum(_layernorm_fm(h, g2_ref[...], be2_ref[...], ones_row), 0.0)

    # Fused heads: rows = [value | econ logits | army logits]   (HEAD_RAW, TB)
    heads = jnp.dot(wh_ref[...], h, preferred_element_type=jnp.float32) + bh_ref[...]

    econ_lp = _log_softmax_ax0(heads[1:1 + N_ECON, :])                 # (N_ECON, TB)
    army_lp = _log_softmax_ax0(heads[1 + N_ECON:1 + N_ECON + N_ARMY, :])  # (N_ARMY, TB)

    # Row 0: value.  Rows 1..: joint[e*N_ARMY + a] = econ_lp[e] + army_lp[a].
    # Each write is a fully lane-dense (1, TB) row; no concat, no pad columns.
    out_ref[0:1, :] = heads[0:1, :]
    for e in range(N_ECON):
        for a in range(N_ARMY):
            r = 1 + e * N_ARMY + a
            out_ref[r:r + 1, :] = econ_lp[e:e + 1, :] + army_lp[a:a + 1, :]


def model_forward(x, params):
    """x: (B, 17) float32.  Returns (value (B,1), logp (B, N_ECON*N_ARMY))."""
    B = x.shape[0]
    tb = _pick_tb(B)
    B_pad = _round_up(max(B, 1), tb)

    # Pad batch then transpose to feature-major (17, B_pad).  Padded (zero)
    # rows flow through LN on a constant vector (var=0 -> rsqrt(eps)) — finite
    # values, discarded by the slice below.
    if B_pad != B:
        x = jnp.pad(x, ((0, B_pad - B), (0, 0)))
    xt = x.T                                                   # (IN_DIM, B_pad)

    grid = (B_pad // tb,)

    def const(shape):
        # Constant index_map: weight stays VMEM-resident across grid steps.
        return pl.BlockSpec(shape, lambda i: (0, 0))

    in_specs = [
        pl.BlockSpec((IN_DIM, tb), lambda i: (0, i)),
        const((HIDDEN, IN_DIM)), const((HIDDEN, 1)), const((HIDDEN, 1)), const((HIDDEN, 1)),
        const((HIDDEN, HIDDEN)), const((HIDDEN, 1)), const((HIDDEN, 1)), const((HIDDEN, 1)),
        const((HEAD_RAW, HIDDEN)), const((HEAD_RAW, 1)),
    ]
    out_spec = pl.BlockSpec((OUT_RAW, tb), lambda i: (0, i))

    flops = 2 * B_pad * (IN_DIM * HIDDEN + HIDDEN * HIDDEN
                         + HIDDEN * HEAD_RAW + 4 * HIDDEN)     # incl. LN reduce matmuls
    transcendentals = B_pad * (2 + N_ECON + N_ARMY + 2)        # rsqrt + exp/log
    weight_bytes = 4 * (IN_DIM * HIDDEN + 3 * HIDDEN
                        + HIDDEN * HIDDEN + 3 * HIDDEN
                        + HIDDEN * HEAD_RAW + HEAD_RAW)
    bytes_accessed = 4 * B_pad * (IN_DIM + OUT_RAW) + weight_bytes

    out = pl.pallas_call(
        model_kernel,
        out_shape=jax.ShapeDtypeStruct((OUT_RAW, B_pad), jnp.float32),
        grid=grid,
        in_specs=in_specs,
        out_specs=out_spec,
        compiler_params=pltpu.CompilerParams(
            dimension_semantics=("parallel",)),
        cost_estimate=pl.CostEstimate(
            flops=flops,
            transcendentals=transcendentals,
            bytes_accessed=bytes_accessed),
    )(
        xt,
        params["w1"], params["b1"], params["g1"], params["be1"],
        params["w2"], params["b2"], params["g2"], params["be2"],
        params["wh"], params["bh"],
    )

    value = out[0:1, :B].T                                     # (B, 1)
    logp = out[1:1 + N_ECON * N_ARMY, :B].T                    # (B, N_ECON*N_ARMY)
    return value, logp


def model_forward_ref(x, params):
    """Pure-JAX reference mirroring the PyTorch forward (batch-major, rank-3 joint)."""
    def ln(h, g, b):
        mean = jnp.mean(h, axis=-1, keepdims=True)
        var = jnp.mean((h - mean) ** 2, axis=-1, keepdims=True)
        return (h - mean) * lax.rsqrt(var + LN_EPS) * g + b

    h = x @ params["w1"].T + params["b1"][:, 0]
    h = jnp.maximum(ln(h, params["g1"][:, 0], params["be1"][:, 0]), 0.0)
    h = h @ params["w2"].T + params["b2"][:, 0]
    h = jnp.maximum(ln(h, params["g2"][:, 0], params["be2"][:, 0]), 0.0)
    heads = h @ params["wh"].T + params["bh"][:, 0]
    value = heads[:, 0:1]
    econ = jax.nn.log_softmax(heads[:, 1:1 + N_ECON], axis=-1)
    army = jax.nn.log_softmax(heads[:, 1 + N_ECON:1 + N_ECON + N_ARMY], axis=-1)
    bz = x.shape[0]
    logp = (econ[:, :, None] + army[:, None, :]).reshape(bz, -1)
    return value, logp


def init_params(key):
    """Deterministic synthetic parameters.  Linear weights are kept in the
    PyTorch-native (out_features, in_features) layout; biases / LN params are
    stored as (features, 1) columns for the feature-major kernel.  The three
    head Linears are fused into one (HEAD_RAW, HIDDEN) slab (no padding)."""
    ks = jax.random.split(key, 5)

    def lin(k, fan_in, fan_out):
        kw, kb = jax.random.split(k)
        scale = 1.0 / jnp.sqrt(jnp.float32(fan_in))
        w = jax.random.uniform(kw, (fan_out, fan_in), jnp.float32, -scale, scale)
        b = jax.random.uniform(kb, (fan_out, 1), jnp.float32, -scale, scale)
        return w, b

    w1, b1 = lin(ks[0], IN_DIM, HIDDEN)
    w2, b2 = lin(ks[1], HIDDEN, HIDDEN)
    wv, bv = lin(ks[2], HIDDEN, 1)
    we, bec = lin(ks[3], HIDDEN, N_ECON)
    wa, bar = lin(ks[4], HIDDEN, N_ARMY)

    wh = jnp.concatenate([wv, we, wa], axis=0)      # (HEAD_RAW, HIDDEN)
    bh = jnp.concatenate([bv, bec, bar], axis=0)    # (HEAD_RAW, 1)

    return dict(
        w1=w1, b1=b1,
        g1=jnp.ones((HIDDEN, 1), jnp.float32), be1=jnp.zeros((HIDDEN, 1), jnp.float32),
        w2=w2, b2=b2,
        g2=jnp.ones((HIDDEN, 1), jnp.float32), be2=jnp.zeros((HIDDEN, 1), jnp.float32),
        wh=wh, bh=bh,
    )


if __name__ == "__main__":
    key = jax.random.PRNGKey(0)
    k_param, k_x = jax.random.split(key)
    params = init_params(k_param)

    # B=8/13 exercise the lane-padding path; B=300 exercises a multi-step grid.
    for i, B in enumerate((8, 13, 300)):
        kx = jax.random.fold_in(k_x, i)
        x = jax.random.normal(kx, (B, IN_DIM), jnp.float32)

        value, logp = model_forward(x, params)
        jax.block_until_ready((value, logp))

        v_ref, lp_ref = model_forward_ref(x, params)
        assert value.shape == (B, 1)
        assert logp.shape == (B, N_ECON * N_ARMY)
        assert jnp.allclose(value, v_ref, atol=1e-4, rtol=1e-4)
        assert jnp.allclose(logp, lp_ref, atol=1e-4, rtol=1e-4)

    print("KERNEL_OK")
</pallas_src>

<mosaic_0001>
module attributes {stable_mosaic.version = 11 : i64} {
  func.func @model_kernel(%arg0: i32, %arg1: memref<17x128xf32, #tpu.memory_space<vmem>>, %arg2: memref<64x17xf32, #tpu.memory_space<vmem>>, %arg3: memref<64x1xf32, #tpu.memory_space<vmem>>, %arg4: memref<64x1xf32, #tpu.memory_space<vmem>>, %arg5: memref<64x1xf32, #tpu.memory_space<vmem>>, %arg6: memref<64x64xf32, #tpu.memory_space<vmem>>, %arg7: memref<64x1xf32, #tpu.memory_space<vmem>>, %arg8: memref<64x1xf32, #tpu.memory_space<vmem>>, %arg9: memref<64x1xf32, #tpu.memory_space<vmem>>, %arg10: memref<5x64xf32, #tpu.memory_space<vmem>>, %arg11: memref<5x1xf32, #tpu.memory_space<vmem>>, %arg12: memref<5x128xf32, #tpu.memory_space<vmem>>) attributes {dimension_semantics = [#tpu.dimension_semantics<parallel>], iteration_bounds = array<i64: 1>, scalar_prefetch = 0 : i64, scratch_operands = 0 : i64, tpu.core_type = #tpu.core_type<tc>, window_params = [{transform_indices = @transform_0, window_bounds = array<i64: 17, 128>}, {pipeline_mode = #tpu.pipeline_mode<synchronous>, transform_indices = @transform_1, window_bounds = array<i64: 64, 17>}, {pipeline_mode = #tpu.pipeline_mode<synchronous>, transform_indices = @transform_2, window_bounds = array<i64: 64, 1>}, {pipeline_mode = #tpu.pipeline_mode<synchronous>, transform_indices = @transform_3, window_bounds = array<i64: 64, 1>}, {pipeline_mode = #tpu.pipeline_mode<synchronous>, transform_indices = @transform_4, window_bounds = array<i64: 64, 1>}, {pipeline_mode = #tpu.pipeline_mode<synchronous>, transform_indices = @transform_5, window_bounds = array<i64: 64, 64>}, {pipeline_mode = #tpu.pipeline_mode<synchronous>, transform_indices = @transform_6, window_bounds = array<i64: 64, 1>}, {pipeline_mode = #tpu.pipeline_mode<synchronous>, transform_indices = @transform_7, window_bounds = array<i64: 64, 1>}, {pipeline_mode = #tpu.pipeline_mode<synchronous>, transform_indices = @transform_8, window_bounds = array<i64: 64, 1>}, {pipeline_mode = #tpu.pipeline_mode<synchronous>, transform_indices = @transform_9, window_bounds = array<i64: 5, 64>}, {pipeline_mode = #tpu.pipeline_mode<synchronous>, transform_indices = @transform_10, window_bounds = array<i64: 5, 1>}, {transform_indices = @transform_11, window_bounds = array<i64: 5, 128>}]} {
    %c0 = arith.constant 0 : index
    %c0_0 = arith.constant 0 : index
    %0 = vector.load %arg1[%c0, %c0_0] : memref<17x128xf32, #tpu.memory_space<vmem>>, vector<17x128xf32>
    %cst = arith.constant 1.000000e+00 : f32
    %1 = vector.broadcast %cst : f32 to vector<1x64xf32>
    %c0_1 = arith.constant 0 : index
    %c0_2 = arith.constant 0 : index
    %2 = vector.load %arg2[%c0_1, %c0_2] : memref<64x17xf32, #tpu.memory_space<vmem>>, vector<64x17xf32>
    %cst_3 = arith.constant dense<0.000000e+00> : vector<64x128xf32>
    %3 = tpu.matmul %2, %0, %cst_3 {dimension_numbers = #tpu.dot_dimension_numbers<[1], [0], [0], [1], [0, 0, 1, 1], [], []>} : vector<64x17xf32>, vector<17x128xf32>, vector<64x128xf32> -> vector<64x128xf32>
    %c0_4 = arith.constant 0 : index
    %c0_5 = arith.constant 0 : index
    %4 = vector.load %arg3[%c0_4, %c0_5] : memref<64x1xf32, #tpu.memory_space<vmem>>, vector<64x1xf32>
    %5 = vector.broadcast %4 : vector<64x1xf32> to vector<64x128xf32>
    %6 = arith.addf %3, %5 : vector<64x128xf32>
    %c0_6 = arith.constant 0 : index
    %c0_7 = arith.constant 0 : index
    %7 = vector.load %arg4[%c0_6, %c0_7] : memref<64x1xf32, #tpu.memory_space<vmem>>, vector<64x1xf32>
    %c0_8 = arith.constant 0 : index
    %c0_9 = arith.constant 0 : index
    %8 = vector.load %arg5[%c0_8, %c0_9] : memref<64x1xf32, #tpu.memory_space<vmem>>, vector<64x1xf32>
    %cst_10 = arith.constant dense<0.000000e+00> : vector<1x128xf32>
    %9 = tpu.matmul %1, %6, %cst_10 {dimension_numbers = #tpu.dot_dimension_numbers<[1], [0], [0], [1], [0, 0, 1, 1], [], []>} : vector<1x64xf32>, vector<64x128xf32>, vector<1x128xf32> -> vector<1x128xf32>
    %cst_11 = arith.constant 1.562500e-02 : f32
    %10 = vector.broadcast %cst_11 : f32 to vector<1x128xf32>
    %11 = arith.mulf %9, %10 : vector<1x128xf32>
    %12 = vector.broadcast %11 : vector<1x128xf32> to vector<64x128xf32>
    %13 = arith.subf %6, %12 : vector<64x128xf32>
    %14 = arith.mulf %13, %13 : vector<64x128xf32>
    %cst_12 = arith.constant dense<0.000000e+00> : vector<1x128xf32>
    %15 = tpu.matmul %1, %14, %cst_12 {dimension_numbers = #tpu.dot_dimension_numbers<[1], [0], [0], [1], [0, 0, 1, 1], [], []>} : vector<1x64xf32>, vector<64x128xf32>, vector<1x128xf32> -> vector<1x128xf32>
    %cst_13 = arith.constant 1.562500e-02 : f32
    %16 = vector.broadcast %cst_13 : f32 to vector<1x128xf32>
    %17 = arith.mulf %15, %16 : vector<1x128xf32>
    %cst_14 = arith.constant 9.99999974E-6 : f32
    %18 = vector.broadcast %cst_14 : f32 to vector<1x128xf32>
    %19 = arith.addf %17, %18 : vector<1x128xf32>
    %20 = math.rsqrt %19 : vector<1x128xf32>
    %21 = vector.broadcast %20 : vector<1x128xf32> to vector<64x128xf32>
    %22 = arith.mulf %13, %21 : vector<64x128xf32>
    %23 = vector.broadcast %7 : vector<64x1xf32> to vector<64x128xf32>
    %24 = arith.mulf %22, %23 : vector<64x128xf32>
    %25 = vector.broadcast %8 : vector<64x1xf32> to vector<64x128xf32>
    %26 = arith.addf %24, %25 : vector<64x128xf32>
    %cst_15 = arith.constant 0.000000e+00 : f32
    %27 = vector.broadcast %cst_15 : f32 to vector<64x128xf32>
    %28 = arith.maximumf %26, %27 : vector<64x128xf32>
    %c0_16 = arith.constant 0 : index
    %c0_17 = arith.constant 0 : index
    %29 = vector.load %arg6[%c0_16, %c0_17] : memref<64x64xf32, #tpu.memory_space<vmem>>, vector<64x64xf32>
    %cst_18 = arith.constant dense<0.000000e+00> : vector<64x128xf32>
    %30 = tpu.matmul %29, %28, %cst_18 {dimension_numbers = #tpu.dot_dimension_numbers<[1], [0], [0], [1], [0, 0, 1, 1], [], []>} : vector<64x64xf32>, vector<64x128xf32>, vector<64x128xf32> -> vector<64x128xf32>
    %c0_19 = arith.constant 0 : index
    %c0_20 = arith.constant 0 : index
    %31 = vector.load %arg7[%c0_19, %c0_20] : memref<64x1xf32, #tpu.memory_space<vmem>>, vector<64x1xf32>
    %32 = vector.broadcast %31 : vector<64x1xf32> to vector<64x128xf32>
    %33 = arith.addf %30, %32 : vector<64x128xf32>
    %c0_21 = arith.constant 0 : index
    %c0_22 = arith.constant 0 : index
    %34 = vector.load %arg8[%c0_21, %c0_22] : memref<64x1xf32, #tpu.memory_space<vmem>>, vector<64x1xf32>
    %c0_23 = arith.constant 0 : index
    %c0_24 = arith.constant 0 : index
    %35 = vector.load %arg9[%c0_23, %c0_24] : memref<64x1xf32, #tpu.memory_space<vmem>>, vector<64x1xf32>
    %cst_25 = arith.constant dense<0.000000e+00> : vector<1x128xf32>
    %36 = tpu.matmul %1, %33, %cst_25 {dimension_numbers = #tpu.dot_dimension_numbers<[1], [0], [0], [1], [0, 0, 1, 1], [], []>} : vector<1x64xf32>, vector<64x128xf32>, vector<1x128xf32> -> vector<1x128xf32>
    %cst_26 = arith.constant 1.562500e-02 : f32
    %37 = vector.broadcast %cst_26 : f32 to vector<1x128xf32>
    %38 = arith.mulf %36, %37 : vector<1x128xf32>
    %39 = vector.broadcast %38 : vector<1x128xf32> to vector<64x128xf32>
    %40 = arith.subf %33, %39 : vector<64x128xf32>
    %41 = arith.mulf %40, %40 : vector<64x128xf32>
    %cst_27 = arith.constant dense<0.000000e+00> : vector<1x128xf32>
    %42 = tpu.matmul %1, %41, %cst_27 {dimension_numbers = #tpu.dot_dimension_numbers<[1], [0], [0], [1], [0, 0, 1, 1], [], []>} : vector<1x64xf32>, vector<64x128xf32>, vector<1x128xf32> -> vector<1x128xf32>
    %cst_28 = arith.constant 1.562500e-02 : f32
    %43 = vector.broadcast %cst_28 : f32 to vector<1x128xf32>
    %44 = arith.mulf %42, %43 : vector<1x128xf32>
    %cst_29 = arith.constant 9.99999974E-6 : f32
    %45 = vector.broadcast %cst_29 : f32 to vector<1x128xf32>
    %46 = arith.addf %44, %45 : vector<1x128xf32>
    %47 = math.rsqrt %46 : vector<1x128xf32>
    %48 = vector.broadcast %47 : vector<1x128xf32> to vector<64x128xf32>
    %49 = arith.mulf %40, %48 : vector<64x128xf32>
    %50 = vector.broadcast %34 : vector<64x1xf32> to vector<64x128xf32>
    %51 = arith.mulf %49, %50 : vector<64x128xf32>
    %52 = vector.broadcast %35 : vector<64x1xf32> to vector<64x128xf32>
    %53 = arith.addf %51, %52 : vector<64x128xf32>
    %cst_30 = arith.constant 0.000000e+00 : f32
    %54 = vector.broadcast %cst_30 : f32 to vector<64x128xf32>
    %55 = arith.maximumf %53, %54 : vector<64x128xf32>
    %c0_31 = arith.constant 0 : index
    %c0_32 = arith.constant 0 : index
    %56 = vector.load %arg10[%c0_31, %c0_32] : memref<5x64xf32, #tpu.memory_space<vmem>>, vector<5x64xf32>
    %cst_33 = arith.constant dense<0.000000e+00> : vector<5x128xf32>
    %57 = tpu.matmul %56, %55, %cst_33 {dimension_numbers = #tpu.dot_dimension_numbers<[1], [0], [0], [1], [0, 0, 1, 1], [], []>} : vector<5x64xf32>, vector<64x128xf32>, vector<5x128xf32> -> vector<5x128xf32>
    %c0_34 = arith.constant 0 : index
    %c0_35 = arith.constant 0 : index
    %58 = vector.load %arg11[%c0_34, %c0_35] : memref<5x1xf32, #tpu.memory_space<vmem>>, vector<5x1xf32>
    %59 = vector.broadcast %58 : vector<5x1xf32> to vector<5x128xf32>
    %60 = arith.addf %57, %59 : vector<5x128xf32>
    %61 = vector.extract_strided_slice %60 {offsets = [1, 0], sizes = [2, 128], strides = [1, 1]} : vector<5x128xf32> to vector<2x128xf32>
    %cst_36 = arith.constant dense<0xFF800000> : vector<128xf32>
    %62 = vector.multi_reduction <maximumf>, %61, %cst_36 [0] : vector<2x128xf32> to vector<128xf32>
    %63 = vector.shape_cast %62 : vector<128xf32> to vector<1x128xf32>
    %64 = vector.broadcast %63 : vector<1x128xf32> to vector<2x128xf32>
    %65 = arith.subf %61, %64 : vector<2x128xf32>
    %66 = math.exp %65 : vector<2x128xf32>
    %cst_37 = arith.constant dense<0.000000e+00> : vector<128xf32>
    %67 = vector.multi_reduction <add>, %66, %cst_37 [0] : vector<2x128xf32> to vector<128xf32>
    %68 = vector.shape_cast %67 : vector<128xf32> to vector<1x128xf32>
    %69 = math.log %68 : vector<1x128xf32>
    %70 = vector.broadcast %69 : vector<1x128xf32> to vector<2x128xf32>
    %71 = arith.subf %65, %70 : vector<2x128xf32>
    %72 = vector.extract_strided_slice %60 {offsets = [3, 0], sizes = [2, 128], strides = [1, 1]} : vector<5x128xf32> to vector<2x128xf32>
    %cst_38 = arith.constant dense<0xFF800000> : vector<128xf32>
    %73 = vector.multi_reduction <maximumf>, %72, %cst_38 [0] : vector<2x128xf32> to vector<128xf32>
    %74 = vector.shape_cast %73 : vector<128xf32> to vector<1x128xf32>
    %75 = vector.broadcast %74 : vector<1x128xf32> to vector<2x128xf32>
    %76 = arith.subf %72, %75 : vector<2x128xf32>
    %77 = math.exp %76 : vector<2x128xf32>
    %cst_39 = arith.constant dense<0.000000e+00> : vector<128xf32>
    %78 = vector.multi_reduction <add>, %77, %cst_39 [0] : vector<2x128xf32> to vector<128xf32>
    %79 = vector.shape_cast %78 : vector<128xf32> to vector<1x128xf32>
    %80 = math.log %79 : vector<1x128xf32>
    %81 = vector.broadcast %80 : vector<1x128xf32> to vector<2x128xf32>
    %82 = arith.subf %76, %81 : vector<2x128xf32>
    %83 = vector.extract_strided_slice %60 {offsets = [0, 0], sizes = [1, 128], strides = [1, 1]} : vector<5x128xf32> to vector<1x128xf32>
    %c0_40 = arith.constant 0 : index
    %c0_41 = arith.constant 0 : index
    %84 = vector.load %arg12[%c0_40, %c0_41] : memref<5x128xf32, #tpu.memory_space<vmem>>, vector<1x128xf32>
    tpu.vector_store %arg12[%c0_40, %c0_41], %83 {strides = array<i32>} : memref<5x128xf32, #tpu.memory_space<vmem>>, vector<1x128xf32>,
    %85 = vector.extract_strided_slice %71 {offsets = [0, 0], sizes = [1, 128], strides = [1, 1]} : vector<2x128xf32> to vector<1x128xf32>
    %86 = vector.extract_strided_slice %82 {offsets = [0, 0], sizes = [1, 128], strides = [1, 1]} : vector<2x128xf32> to vector<1x128xf32>
    %87 = arith.addf %85, %86 : vector<1x128xf32>
    %c1 = arith.constant 1 : index
    %c0_42 = arith.constant 0 : index
    %88 = vector.load %arg12[%c1, %c0_42] : memref<5x128xf32, #tpu.memory_space<vmem>>, vector<1x128xf32>
    tpu.vector_store %arg12[%c1, %c0_42], %87 {strides = array<i32>} : memref<5x128xf32, #tpu.memory_space<vmem>>, vector<1x128xf32>,
    %89 = vector.extract_strided_slice %71 {offsets = [0, 0], sizes = [1, 128], strides = [1, 1]} : vector<2x128xf32> to vector<1x128xf32>
    %90 = vector.extract_strided_slice %82 {offsets = [1, 0], sizes = [1, 128], strides = [1, 1]} : vector<2x128xf32> to vector<1x128xf32>
    %91 = arith.addf %89, %90 : vector<1x128xf32>
    %c2 = arith.constant 2 : index
    %c0_43 = arith.constant 0 : index
    %92 = vector.load %arg12[%c2, %c0_43] : memref<5x128xf32, #tpu.memory_space<vmem>>, vector<1x128xf32>
    tpu.vector_store %arg12[%c2, %c0_43], %91 {strides = array<i32>} : memref<5x128xf32, #tpu.memory_space<vmem>>, vector<1x128xf32>,
    %93 = vector.extract_strided_slice %71 {offsets = [1, 0], sizes = [1, 128], strides = [1, 1]} : vector<2x128xf32> to vector<1x128xf32>
    %94 = vector.extract_strided_slice %82 {offsets = [0, 0], sizes = [1, 128], strides = [1, 1]} : vector<2x128xf32> to vector<1x128xf32>
    %95 = arith.addf %93, %94 : vector<1x128xf32>
    %c3 = arith.constant 3 : index
    %c0_44 = arith.constant 0 : index
    %96 = vector.load %arg12[%c3, %c0_44] : memref<5x128xf32, #tpu.memory_space<vmem>>, vector<1x128xf32>
    tpu.vector_store %arg12[%c3, %c0_44], %95 {strides = array<i32>} : memref<5x128xf32, #tpu.memory_space<vmem>>, vector<1x128xf32>,
    %97 = vector.extract_strided_slice %71 {offsets = [1, 0], sizes = [1, 128], strides = [1, 1]} : vector<2x128xf32> to vector<1x128xf32>
    %98 = vector.extract_strided_slice %82 {offsets = [1, 0], sizes = [1, 128], strides = [1, 1]} : vector<2x128xf32> to vector<1x128xf32>
    %99 = arith.addf %97, %98 : vector<1x128xf32>
    %c4 = arith.constant 4 : index
    %c0_45 = arith.constant 0 : index
    %100 = vector.load %arg12[%c4, %c0_45] : memref<5x128xf32, #tpu.memory_space<vmem>>, vector<1x128xf32>
    tpu.vector_store %arg12[%c4, %c0_45], %99 {strides = array<i32>} : memref<5x128xf32, #tpu.memory_space<vmem>>, vector<1x128xf32>,
    return
  }
  func.func @transform_0(%arg0: i32) -> (i32, i32) {
    %c0_i32 = arith.constant 0 : i32
    %c0_i32_0 = arith.constant 0 : i32
    return %c0_i32, %arg0 : i32, i32
  }
  func.func @transform_1(%arg0: i32) -> (i32, i32) {
    %c0_i32 = arith.constant 0 : i32
    %c0_i32_0 = arith.constant 0 : i32
    %c0_i32_1 = arith.constant 0 : i32
    return %c0_i32, %c0_i32_0 : i32, i32
  }
  func.func @transform_2(%arg0: i32) -> (i32, i32) {
    %c0_i32 = arith.constant 0 : i32
    %c0_i32_0 = arith.constant 0 : i32
    %c0_i32_1 = arith.constant 0 : i32
    return %c0_i32, %c0_i32_0 : i32, i32
  }
  func.func @transform_3(%arg0: i32) -> (i32, i32) {
    %c0_i32 = arith.constant 0 : i32
    %c0_i32_0 = arith.constant 0 : i32
    %c0_i32_1 = arith.constant 0 : i32
    return %c0_i32, %c0_i32_0 : i32, i32
  }
  func.func @transform_4(%arg0: i32) -> (i32, i32) {
    %c0_i32 = arith.constant 0 : i32
    %c0_i32_0 = arith.constant 0 : i32
    %c0_i32_1 = arith.constant 0 : i32
    return %c0_i32, %c0_i32_0 : i32, i32
  }
  func.func @transform_5(%arg0: i32) -> (i32, i32) {
    %c0_i32 = arith.constant 0 : i32
    %c0_i32_0 = arith.constant 0 : i32
    %c0_i32_1 = arith.constant 0 : i32
    return %c0_i32, %c0_i32_0 : i32, i32
  }
  func.func @transform_6(%arg0: i32) -> (i32, i32) {
    %c0_i32 = arith.constant 0 : i32
    %c0_i32_0 = arith.constant 0 : i32
    %c0_i32_1 = arith.constant 0 : i32
    return %c0_i32, %c0_i32_0 : i32, i32
  }
  func.func @transform_7(%arg0: i32) -> (i32, i32) {
    %c0_i32 = arith.constant 0 : i32
    %c0_i32_0 = arith.constant 0 : i32
    %c0_i32_1 = arith.constant 0 : i32
    return %c0_i32, %c0_i32_0 : i32, i32
  }
  func.func @transform_8(%arg0: i32) -> (i32, i32) {
    %c0_i32 = arith.constant 0 : i32
    %c0_i32_0 = arith.constant 0 : i32
    %c0_i32_1 = arith.constant 0 : i32
    return %c0_i32, %c0_i32_0 : i32, i32
  }
  func.func @transform_9(%arg0: i32) -> (i32, i32) {
    %c0_i32 = arith.constant 0 : i32
    %c0_i32_0 = arith.constant 0 : i32
    %c0_i32_1 = arith.constant 0 : i32
    return %c0_i32, %c0_i32_0 : i32, i32
  }
  func.func @transform_10(%arg0: i32) -> (i32, i32) {
    %c0_i32 = arith.constant 0 : i32
    %c0_i32_0 = arith.constant 0 : i32
    %c0_i32_1 = arith.constant 0 : i32
    return %c0_i32, %c0_i32_0 : i32, i32
  }
  func.func @transform_11(%arg0: i32) -> (i32, i32) {
    %c0_i32 = arith.constant 0 : i32
    %c0_i32_0 = arith.constant 0 : i32
    return %c0_i32, %arg0 : i32, i32
  }
}

</mosaic_0001>

<bundles_post_ra>
// kernel: tpu_custom_call.1
= control target key start
LH: loop header
LB: loop body
LE: loop exit
PB: predicated region body
PF: predicated region fallthrough
CT: control target
= control target key end

     0   :  { %vm98_vm0 = vcmask 138240   ;;  %v1530_v3 = vmov 0   ;;  %vm123_vm1 = vcmask 1040384   ;;  %s1876_s0 = inlined_call_operand.vmem [shape: f32[17,128], index: 0, kind: input, shape index: {}]   ;;  %s1877_s1 = inlined_call_operand.vmem [shape: f32[64,17], index: 1, kind: input, shape index: {}]   ;;  %s1878_s2 = inlined_call_operand.vmem [shape: f32[64,1], index: 2, kind: input, shape index: {}]   ;;  %s1879_s3 = inlined_call_operand.vmem [shape: f32[64,1], index: 3, kind: input, shape index: {}]   ;;  %s1880_s4 = inlined_call_operand.vmem [shape: f32[64,1], index: 4, kind: input, shape index: {}]   ;;  %s1881_s5 = inlined_call_operand.vmem [shape: f32[64,64], index: 5, kind: input, shape index: {}]   ;;  %s1882_s6 = inlined_call_operand.vmem [shape: f32[64,1], index: 6, kind: input, shape index: {}]   ;;  %s1883_s7 = inlined_call_operand.vmem [shape: f32[64,1], index: 7, kind: input, shape index: {}]   ;;  %s1884_s8 = inlined_call_operand.vmem [shape: f32[64,1], index: 8, kind: input, shape index: {}]   ;;  %s1885_s9 = inlined_call_operand.vmem [shape: f32[5,64], index: 9, kind: input, shape index: {}]   ;;  %s1886_s10 = inlined_call_operand.vmem [shape: f32[5,1], index: 10, kind: input, shape index: {}]   ;;  %s1887_s11 = inlined_call_operand.hbm [shape: f32[5,128], index: 11, kind: output, shape index: {}]  }
   0x1   :  { %v52_v0 = vld [vmem:[%s1878_s2 + $0x10] sm:$0xff]  ;;  %v50_v1 = vld [vmem:[%s1878_s2] sm:$0xff]  ;;  %1493 = vset.pattern.permute.xlu1 %v1530_v3  ;;  %1492 = vset.pattern.permute.xlu0 %v1530_v3  ;;  %v40_v4 = vld [vmem:[%s1876_s0 + $0x8] sm:$0xff] }
   0x2   :  { %v39_v2 = vld [vmem:[%s1876_s0] sm:$0xff]  ;;  %70 = vperm.xlu1 %1493, %v52_v0   ;;  %60 = vperm.xlu0 %1492, %v50_v1   ;;  %v53_v7 = vld [vmem:[%s1878_s2 + $0x18] sm:$0xff]  ;;  %v51_v8 = vld [vmem:[%s1878_s2 + $0x8] sm:$0xff] }
   0x3   :  { %v1406_v5 = vpack.c.bf16 %v40_v4, %v39_v2  ;;  %v42_v6 = vld [vmem:[%s1877_s1] sm:$0xff]  ;;  %v41_v9 = vld [vmem:[%s1876_s0 + $0x10] sm:$0x1]  ;;  %v43_v10 = vld [vmem:[%s1877_s1 + $0x8] sm:$0xff] }
   0x4   :  { %1271 = vmatprep.mubr.msk.f32.mxu0 %vm98_vm0, %v42_v6  ;;  %v55_v11 = vld [vmem:[%s1878_s2 + $0x28] sm:$0xff]  ;;  %v54_v12 = vld [vmem:[%s1878_s2 + $0x20] sm:$0xff]  ;;  %v44_v13 = vld [vmem:[%s1877_s1 + $0x10] sm:$0xff] }
   0x5   :  { %1407 = vmatprep.subr.bf16.mxu0 %v1406_v5  ;;  %v45_v14 = vld [vmem:[%s1877_s1 + $0x18] sm:$0xff]  ;;  %v56_v16 = vld [vmem:[%s1878_s2 + $0x30] sm:$0xff]  ;;  %v46_v17 = vld [vmem:[%s1877_s1 + $0x20] sm:$0xff] }
   0x6   :  { %1409 = vmatpush3.bf16.msra.mxu0 %v1406_v5  ;;  %75 = vperm.xlu1 %1493, %v53_v7   ;;  %v57_v15 = vld [vmem:[%s1878_s2 + $0x38] sm:$0xff]  ;;  %v47_v18 = vld [vmem:[%s1877_s1 + $0x28] sm:$0xff]  ;;  %v232_v20 = vld [vmem:[%s1879_s3] sm:$0xff] }
   0x7   :  { %65 = vperm.xlu0 %1492, %v51_v8   ;;  %1269 = vmatprep.subr.msk.mxu0 %vm123_vm1, %v41_v9  ;;  %v233_v19 = vld [vmem:[%s1879_s3 + $0x8] sm:$0xff]  ;;  %v48_v21 = vld [vmem:[%s1877_s1 + $0x30] sm:$0xff]  ;;  %v49_v22 = vld [vmem:[%s1877_s1 + $0x38] sm:$0xff] }
   0x8   :  { %v241_v23 = vld [vmem:[%s1880_s4 + $0x8] sm:$0xff]  ;;  %v240_v24 = vld [vmem:[%s1880_s4] sm:$0xff] }
   0xa   :  { %1270 = vmatpush3.msk.msra.mxu0 %vm123_vm1, %v41_v9  ;;  %85 = vperm.xlu1 %1493, %v55_v11  }
   0xb   :  { %1272 = vmatmul.mubr.msk.f32.vlgmr.msra.gmra.mrb[0].mxu0 %vm98_vm0, %v43_v10  ;;  %80 = vperm.xlu0 %1492, %v54_v12  }
   0xc   :  { %1274 = vmatprep.mubr.msk.f32.mxu0 %vm98_vm0, %v44_v13 }
   0xe   :  { %95 = vperm.xlu1 %1493, %v57_v15  }
   0xf   :  { %1275 = vmatmul.mubr.msk.f32.gmra.mrb[2].mxu0 %vm98_vm0, %v45_v14  ;;  %90 = vperm.xlu0 %1492, %v56_v16  }
  0x10   :  { %1277 = vmatprep.mubr.msk.f32.mxu0 %vm98_vm0, %v46_v17 }
  0x12   :  { %435 = vperm.xlu1 %1493, %v233_v19  }
  0x13   :  { %1278 = vmatmul.mubr.msk.f32.gmra.mrb[4].mxu0 %vm98_vm0, %v47_v18  ;;  %430 = vperm.xlu0 %1492, %v232_v20  }
  0x14   :  { %1280 = vmatprep.mubr.msk.f32.mxu0 %vm98_vm0, %v48_v21 }
  0x15   :  { %16 = vsyncpa [#allocation3], 0  ;;  %v235_v25 = vld [vmem:[%s1879_s3 + $0x18] sm:$0xff]  ;;  %v234_v26 = vld [vmem:[%s1879_s3 + $0x10] sm:$0xff]  ;;  %v1531_v62 = vmov 0.0|0.0   ;;  %vm1532_vm2 = vmmov 0  }
  0x16   :  { %483 = vperm.xlu1 %1493, %v241_v23   ;;  %v243_v27 = vld [vmem:[%s1880_s4 + $0x18] sm:$0xff]  ;;  %v242_v28 = vld [vmem:[%s1880_s4 + $0x10] sm:$0xff]  ;;  %v237_v29 = vld [vmem:[%s1879_s3 + $0x28] sm:$0xff]  ;;  %1410 = vmatprep.subr.bf16.mxu1 %v1531_v62  ;;  %v1533_v63 = vmov 0.0   ;;  %vm248_vm3 = vcmask 523264   ;;  %vm1093_vm4 = vcmask 1042433  }
  0x17   :  { %1281 = vmatmul.mubr.msk.f32.gmra.mrb[6].mxu0 %vm98_vm0, %v49_v22  ;;  %478 = vperm.xlu0 %1492, %v240_v24   ;;  %v236_v30 = vld [vmem:[%s1879_s3 + $0x20] sm:$0xff]  ;;  %v245_v31 = vld [vmem:[%s1880_s4 + $0x28] sm:$0xff]  ;;  %v239_v33 = vld [vmem:[%s1879_s3 + $0x38] sm:$0xff]  ;;  %vm1118_vm5 = vcmask 1044483   ;;  %vm1107_vm6 = vcmask 1041408  }
  0x18   :  { %v244_v32 = vld [vmem:[%s1880_s4 + $0x20] sm:$0xff]  ;;  %v238_v34 = vld [vmem:[%s1879_s3 + $0x30] sm:$0xff]  ;;  %v247_v35 = vld [vmem:[%s1880_s4 + $0x38] sm:$0xff]  ;;  %1422 = vmatprep.subr.bf16.mxu0 %v1531_v62  ;;  %1299 = vmatprep.mubr.msk.f32.mxu1 %vm1532_vm2, %v1533_v63 }
  0x19   :  { %v246_v36 = vld [vmem:[%s1880_s4 + $0x30] sm:$0xff]  ;;  %v541_v37 = vld [vmem:[%s1882_s6 + $0x8] sm:$0xff]  ;;  %v540_v38 = vld [vmem:[%s1882_s6] sm:$0xff]  ;;  %1318 = vmatprep.mubr.msk.f32.mxu0 %vm1532_vm2, %v1533_v63 }
  0x1a   :  { %445 = vperm.xlu1 %1493, %v235_v25   ;;  %v543_v39 = vld [vmem:[%s1882_s6 + $0x18] sm:$0xff]  ;;  %v542_v40 = vld [vmem:[%s1882_s6 + $0x10] sm:$0xff]  ;;  %v545_v41 = vld [vmem:[%s1882_s6 + $0x28] sm:$0xff] }
  0x1b   :  { %440 = vperm.xlu0 %1492, %v234_v26   ;;  %v544_v42 = vld [vmem:[%s1882_s6 + $0x20] sm:$0xff]  ;;  %v547_v43 = vld [vmem:[%s1882_s6 + $0x38] sm:$0xff]  ;;  %v546_v44 = vld [vmem:[%s1882_s6 + $0x30] sm:$0xff] }
  0x1c   :  { %v718_v45 = vld [vmem:[%s1883_s7 + $0x8] sm:$0xff]  ;;  %v717_v46 = vld [vmem:[%s1883_s7] sm:$0xff]  ;;  %v720_v49 = vld [vmem:[%s1883_s7 + $0x18] sm:$0xff] }
  0x1d   :  { %v726_v47 = vld [vmem:[%s1884_s8 + $0x8] sm:$0xff]  ;;  %v725_v48 = vld [vmem:[%s1884_s8] sm:$0xff]  ;;  %v719_v50 = vld [vmem:[%s1883_s7 + $0x10] sm:$0xff] }
  0x1e   :  { %493 = vperm.xlu1 %1493, %v243_v27   ;;  %v728_v51 = vld [vmem:[%s1884_s8 + $0x18] sm:$0xff]  ;;  %v727_v52 = vld [vmem:[%s1884_s8 + $0x10] sm:$0xff]  ;;  %v722_v53 = vld [vmem:[%s1883_s7 + $0x28] sm:$0xff] }
  0x1f   :  { %488 = vperm.xlu0 %1492, %v242_v28   ;;  %v721_v54 = vld [vmem:[%s1883_s7 + $0x20] sm:$0xff]  ;;  %v730_v55 = vld [vmem:[%s1884_s8 + $0x28] sm:$0xff]  ;;  %v724_v57 = vld [vmem:[%s1883_s7 + $0x38] sm:$0xff]  ;;  %v1534_v28 = vmov 1.0  }
  0x20   :  { %v729_v56 = vld [vmem:[%s1884_s8 + $0x20] sm:$0xff]  ;;  %v723_v58 = vld [vmem:[%s1883_s7 + $0x30] sm:$0xff]  ;;  %v732_v59 = vld [vmem:[%s1884_s8 + $0x38] sm:$0xff] }
  0x21   :  { %v731_v60 = vld [vmem:[%s1884_s8 + $0x30] sm:$0xff]  ;;  %v1014_v61 = vld [vmem:[%s1886_s10] sm:$0x1f] }
  0x22   :  { %455 = vperm.xlu1 %1493, %v237_v29   ;;  %v323_v29 = vlaneseq }
  0x23   :  { %450 = vperm.xlu0 %1492, %v236_v30  }
  0x24   :  { %v324_v30 = vshrl.u32 %v323_v29, 7 }
  0x26   :  { %503 = vperm.xlu1 %1493, %v245_v31   ;;  %v1795_v31 = vsub.s32 0, %v324_v30 }
  0x27   :  { %498 = vperm.xlu0 %1492, %v244_v32  }
  0x2a   :  { %465 = vperm.xlu1 %1493, %v239_v33  }
  0x2b   :  { %460 = vperm.xlu0 %1492, %v238_v34  }
  0x2e   :  { %513 = vperm.xlu1 %1493, %v247_v35  }
  0x2f   :  { %508 = vperm.xlu0 %1492, %v246_v36  }
  0x32   :  { %555 = vperm.xlu1 %1493, %v541_v37  }
  0x33   :  { %550 = vperm.xlu0 %1492, %v540_v38  }
  0x36   :  { %565 = vperm.xlu1 %1493, %v543_v39  }
  0x37   :  { %560 = vperm.xlu0 %1492, %v542_v40  }
  0x3a   :  { %575 = vperm.xlu1 %1493, %v545_v41  }
  0x3b   :  { %570 = vperm.xlu0 %1492, %v544_v42  }
  0x3e   :  { %585 = vperm.xlu1 %1493, %v547_v43  }
  0x3f   :  { %580 = vperm.xlu0 %1492, %v546_v44  }
  0x42   :  { %916 = vperm.xlu1 %1493, %v718_v45  }
  0x43   :  { %911 = vperm.xlu0 %1492, %v717_v46  }
  0x46   :  { %964 = vperm.xlu1 %1493, %v726_v47  }
  0x47   :  { %959 = vperm.xlu0 %1492, %v725_v48  }
  0x4a   :  { %926 = vperm.xlu1 %1493, %v720_v49  }
  0x4b   :  { %921 = vperm.xlu0 %1492, %v719_v50  }
  0x4e   :  { %974 = vperm.xlu1 %1493, %v728_v51  }
  0x4f   :  { %969 = vperm.xlu0 %1492, %v727_v52  }
  0x52   :  { %936 = vperm.xlu1 %1493, %v722_v53  }
  0x53   :  { %931 = vperm.xlu0 %1492, %v721_v54  }
  0x56   :  { %984 = vperm.xlu1 %1493, %v730_v55  }
  0x57   :  { %979 = vperm.xlu0 %1492, %v729_v56   ;;  %v532_v56 = vld [vmem:[%s1881_s5] sm:$0xff] }
  0x5a   :  { %946 = vperm.xlu1 %1493, %v724_v57  }
  0x5b   :  { %941 = vperm.xlu0 %1492, %v723_v58  }
  0x5e   :  { %994 = vperm.xlu1 %1493, %v732_v59  }
  0x5f   :  { %989 = vperm.xlu0 %1492, %v731_v60  }
  0x63   :  { %1017 = vperm.xlu0 %1492, %v1014_v61  }
  0x81   :  { %v71_v0 = vpop.permute.xlu1 %70  ;;  %v61_v1 = vpop.permute.xlu0 %60 }
  0x85   :  { %v76_v2 = vpop.permute.xlu1 %75 }
  0x86   :  { %v66_v3 = vpop.permute.xlu0 %65 }
  0x89   :  { %v86_v12 = vpop.permute.xlu1 %85 }
  0x8a   :  { %v81_v14 = vpop.permute.xlu0 %80 }
  0x8d   :  { %v96_v20 = vpop.permute.xlu1 %95 }
  0x8e   :  { %v91_v23 = vpop.permute.xlu0 %90 }
  0x91   :  { %v436_v58 = vpop.permute.xlu1 %435 }
  0x92   :  { %v431_v57 = vpop.permute.xlu0 %430 }
  0x95   :  { %v484_v60 = vpop.permute.xlu1 %483 }
  0x96   :  { %v479_v59 = vpop.permute.xlu0 %478 }
  0x9a   :  { %v441_v61 = vpop.permute.xlu0 %440 }
  0xde   :  { %v1273_v4 = vpop.f32.mrb[0].mxu0 }
  0xdf   :  { %v199_v5 = vadd.f32 %v1273_v4, %v66_v3  ;;  %v193_v6 = vpop.f32.mrb[1].mxu0  ;;  %v489_v4 = vpop.permute.xlu0 %488 }
  0xe0   :  { %v194_v7 = vadd.f32 %v193_v6, %v61_v1 }
  0xe2   :  { %v1276_v8 = vpop.f32.mrb[2].mxu0  ;;  %v1411_v9 = vpack.c.bf16 %v199_v5, %v194_v7 }
  0xe3   :  { %v209_v10 = vadd.f32 %v1276_v8, %v76_v2  ;;  %v203_v11 = vpop.f32.mrb[3].mxu0 }
  0xe4   :  { %v204_v13 = vadd.f32 %v203_v11, %v71_v0  ;;  %1412 = vmatpush3.bf16.msra.mxu1 %v1411_v9  ;;  %v446_v0 = vpop.permute.xlu1 %445 }
  0xe5   :  { %1413 = vmatprep.subr.bf16.mxu1 %v1531_v62 }
  0xe6   :  { %v1414_v15 = vpack.c.bf16 %v209_v10, %v204_v13  ;;  %v1279_v16 = vpop.f32.mrb[4].mxu0 }
  0xe7   :  { %v219_v17 = vadd.f32 %v1279_v16, %v86_v12  ;;  %v213_v18 = vpop.f32.mrb[5].mxu0 }
  0xe8   :  { %v214_v19 = vadd.f32 %v213_v18, %v81_v14  ;;  %1415 = vmatpush3.bf16.msra.mxu1 %v1414_v15 }
  0xe9   :  { %1416 = vmatprep.subr.bf16.mxu1 %v1531_v62 }
  0xea   :  { %v1417_v21 = vpack.c.bf16 %v219_v17, %v214_v19  ;;  %v1282_v22 = vpop.f32.mrb[6].mxu0 }
  0xeb   :  { %v229_v24 = vadd.f32 %v1282_v22, %v96_v20  ;;  %v223_v25 = vpop.f32.mrb[7].mxu0 }
  0xec   :  { %v224_v26 = vadd.f32 %v223_v25, %v91_v23  ;;  %1418 = vmatpush3.bf16.msra.mxu1 %v1417_v21 }
  0xed   :  { %1419 = vmatprep.subr.bf16.mxu1 %v1531_v62 }
  0xee   :  { %v1420_v27 = vpack.c.bf16 %v229_v24, %v224_v26 }
  0xf0   :  { %1421 = vmatpush3.bf16.msra.mxu1 %v1420_v27 }
  0xf3   :  { %1300 = vmatmul.mubr.msk.f32.vlgmr.msra.gmra.mrb[0].mxu1 %vm248_vm3, %v1534_v28 }
  0xf4   :  { %1337 = vmatprep.mubr.msk.f32.mxu1 %vm248_vm3, %v532_v56  ;;  %v534_v56 = vld [vmem:[%s1881_s5 + $0x10] sm:$0xff] }
 0x1c6   :  { %v318_v32 = vpop.f32.mrb[0].mxu1 }
 0x1c7   :  { %v322_v33 = vmul.f32 0.015625, %v318_v32  ;;  %v1301_v34 = vpop.f32.mrb[1].mxu1 }
 0x1c9   :  { %v326_v35 = vrot.slane %v322_v33, %v1795_v31 }
 0x1cb   :  { %v327_v36 = vsub.f32 %v194_v7, %v326_v35  ;;  %v328_v37 = vsub.f32 %v199_v5, %v326_v35  ;;  %v329_v38 = vsub.f32 %v204_v13, %v326_v35  ;;  %v330_v39 = vsub.f32 %v209_v10, %v326_v35  ;;  %v494_v5 = vpop.permute.xlu1 %493  ;;  %v451_v7 = vpop.permute.xlu0 %450 }
 0x1cc   :  { %v331_v42 = vsub.f32 %v214_v19, %v326_v35  ;;  %v332_v46 = vsub.f32 %v219_v17, %v326_v35  ;;  %v333_v47 = vsub.f32 %v224_v26, %v326_v35  ;;  %v334_v51 = vsub.f32 %v229_v24, %v326_v35 }
 0x1cd   :  { %v335_v40 = vmul.f32 %v327_v36, %v327_v36  ;;  %v336_v41 = vmul.f32 %v328_v37, %v328_v37  ;;  %v337_v44 = vmul.f32 %v329_v38, %v329_v38  ;;  %v338_v45 = vmul.f32 %v330_v39, %v330_v39 }
 0x1ce   :  { %v339_v49 = vmul.f32 %v331_v42, %v331_v42  ;;  %v340_v50 = vmul.f32 %v332_v46, %v332_v46  ;;  %v341_v53 = vmul.f32 %v333_v47, %v333_v47  ;;  %v342_v54 = vmul.f32 %v334_v51, %v334_v51 }
 0x1cf   :  { %v1423_v43 = vpack.c.bf16 %v336_v41, %v335_v40  ;;  %v1426_v48 = vpack.c.bf16 %v338_v45, %v337_v44  ;;  %v456_v8 = vpop.permute.xlu1 %455  ;;  %v499_v9 = vpop.permute.xlu0 %498 }
 0x1d0   :  { %v1429_v52 = vpack.c.bf16 %v340_v50, %v339_v49  ;;  %v1432_v55 = vpack.c.bf16 %v342_v54, %v341_v53 }
 0x1d1   :  { %1424 = vmatpush3.bf16.msra.mxu0 %v1423_v43 }
 0x1d2   :  { %1425 = vmatprep.subr.bf16.mxu0 %v1531_v62 }
 0x1d3   :  { %v504_v11 = vpop.permute.xlu1 %503  ;;  %v461_v21 = vpop.permute.xlu0 %460 }
 0x1d5   :  { %1427 = vmatpush3.bf16.msra.mxu0 %v1426_v48 }
 0x1d6   :  { %1428 = vmatprep.subr.bf16.mxu0 %v1531_v62 }
 0x1d7   :  { %v466_v26 = vpop.permute.xlu1 %465  ;;  %v509_v43 = vpop.permute.xlu0 %508 }
 0x1d9   :  { %1430 = vmatpush3.bf16.msra.mxu0 %v1429_v52 }
 0x1da   :  { %1431 = vmatprep.subr.bf16.mxu0 %v1531_v62 }
 0x1db   :  { %v514_v45 = vpop.permute.xlu1 %513 }
 0x1dd   :  { %1433 = vmatpush3.bf16.msra.mxu0 %v1432_v55  ;;  %v533_v55 = vld [vmem:[%s1881_s5 + $0x8] sm:$0xff] }
 0x1de   :  { %1450 = vmatprep.subr.bf16.mxu0 %v1531_v62 }
 0x1e0   :  { %1319 = vmatmul.mubr.msk.f32.vlgmr.msra.gmra.mrb[8].mxu0 %vm248_vm3, %v1534_v28 }
 0x1e1   :  { %1365 = vmatprep.mubr.msk.f32.mxu0 %vm1532_vm2, %v1533_v63 }
 0x2b3   :  { %v409_v1 = vpop.f32.mrb[8].mxu0 }
 0x2b4   :  { %v413_v2 = vmul.f32 0.015625, %v409_v1  ;;  %v1320_v3 = vpop.f32.mrb[9].mxu0  ;;  %v551_v1 = vpop.permute.xlu0 %550 }
 0x2b6   :  { %v414_v6 = vadd.f32 1e-05, %v413_v2 }
 0x2b8   :  { %1494 = vrsqrt.f32 %v414_v6 }
 0x2c2   :  { %v1495_v10 = vpop.eup %1494 }
 0x2c3   :  { %v419_v12 = vrot.slane %v1495_v10, %v1795_v31 }
 0x2c5   :  { %v420_v13 = vmul.f32 %v419_v12, %v327_v36  ;;  %v421_v14 = vmul.f32 %v419_v12, %v328_v37  ;;  %v422_v15 = vmul.f32 %v419_v12, %v329_v38  ;;  %v423_v16 = vmul.f32 %v419_v12, %v330_v39 }
 0x2c6   :  { %v424_v17 = vmul.f32 %v419_v12, %v331_v42  ;;  %v425_v18 = vmul.f32 %v419_v12, %v332_v46  ;;  %v426_v19 = vmul.f32 %v419_v12, %v333_v47  ;;  %v427_v20 = vmul.f32 %v419_v12, %v334_v51 }
 0x2c7   :  { %v468_v22 = vmul.f32 %v431_v57, %v420_v13  ;;  %v469_v23 = vmul.f32 %v436_v58, %v421_v14  ;;  %v470_v24 = vmul.f32 %v441_v61, %v422_v15  ;;  %v471_v25 = vmul.f32 %v446_v0, %v423_v16  ;;  %v535_v57 = vld [vmem:[%s1881_s5 + $0x18] sm:$0xff]  ;;  %v536_v58 = vld [vmem:[%s1881_s5 + $0x20] sm:$0xff]  ;;  %v556_v0 = vpop.permute.xlu1 %555 }
 0x2c8   :  { %v472_v27 = vmul.f32 %v451_v7, %v424_v17  ;;  %v473_v29 = vmul.f32 %v456_v8, %v425_v18  ;;  %v474_v37 = vmul.f32 %v461_v21, %v426_v19  ;;  %v475_v38 = vmul.f32 %v466_v26, %v427_v20  ;;  %v539_v61 = vld [vmem:[%s1881_s5 + $0x38] sm:$0xff] }
 0x2c9   :  { %v516_v30 = vadd.f32 %v479_v59, %v468_v22  ;;  %v517_v32 = vadd.f32 %v484_v60, %v469_v23  ;;  %v518_v33 = vadd.f32 %v489_v4, %v470_v24  ;;  %v519_v34 = vadd.f32 %v494_v5, %v471_v25  ;;  %v537_v59 = vld [vmem:[%s1881_s5 + $0x28] sm:$0xff]  ;;  %v538_v60 = vld [vmem:[%s1881_s5 + $0x30] sm:$0xff]  ;;  %v561_v4 = vpop.permute.xlu0 %560 }
 0x2ca   :  { %v520_v35 = vadd.f32 %v499_v9, %v472_v27  ;;  %v521_v36 = vadd.f32 %v504_v11, %v473_v29  ;;  %v522_v46 = vadd.f32 %v509_v43, %v474_v37  ;;  %v523_v50 = vadd.f32 %v514_v45, %v475_v38 }
 0x2cb   :  { %v524_v39 = vmax.f32 %v516_v30, 0.0  ;;  %v525_v40 = vmax.f32 %v517_v32, 0.0  ;;  %v526_v41 = vmax.f32 %v518_v33, 0.0  ;;  %v527_v42 = vmax.f32 %v519_v34, 0.0  ;;  %v566_v2 = vpop.permute.xlu1 %565 }
 0x2cc   :  { %v528_v48 = vmax.f32 %v520_v35, 0.0  ;;  %v529_v49 = vmax.f32 %v521_v36, 0.0  ;;  %v530_v52 = vmax.f32 %v522_v46, 0.0  ;;  %v531_v53 = vmax.f32 %v523_v50, 0.0 }
 0x2cd   :  { %v1434_v44 = vpack.c.bf16 %v525_v40, %v524_v39  ;;  %v1438_v47 = vpack.c.bf16 %v527_v42, %v526_v41  ;;  %v571_v14 = vpop.permute.xlu0 %570 }
 0x2ce   :  { %v1442_v51 = vpack.c.bf16 %v529_v49, %v528_v48  ;;  %v1446_v54 = vpack.c.bf16 %v531_v53, %v530_v52 }
 0x2cf   :  { %1435 = vmatprep.subr.bf16.mxu1 %v1434_v44  ;;  %v576_v12 = vpop.permute.xlu1 %575 }
 0x2d0   :  { %1437 = vmatpush3.bf16.msra.mxu1 %v1434_v44 }
 0x2d1   :  { %1439 = vmatprep.subr.bf16.mxu1 %v1438_v47  ;;  %v581_v23 = vpop.permute.xlu0 %580 }
 0x2d3   :  { %v586_v20 = vpop.permute.xlu1 %585 }
 0x2d4   :  { %1441 = vmatpush3.bf16.msra.mxu1 %v1438_v47 }
 0x2d5   :  { %1443 = vmatprep.subr.bf16.mxu1 %v1442_v51  ;;  %v912_v53 = vpop.permute.xlu0 %911 }
 0x2d8   :  { %1445 = vmatpush3.bf16.msra.mxu1 %v1442_v51 }
 0x2d9   :  { %1447 = vmatprep.subr.bf16.mxu1 %v1446_v54 }
 0x2dc   :  { %1449 = vmatpush3.bf16.msra.mxu1 %v1446_v54  ;;  %v917_v54 = vpop.permute.xlu1 %916 }
 0x2dd   :  { %1462 = vmatprep.subr.bf16.mxu1 %v1531_v62 }
 0x2df   :  { %1338 = vmatmul.mubr.msk.f32.vlgmr.msra.gmra.mrb[2].mxu1 %vm248_vm3, %v533_v55  ;;  %v960_v55 = vpop.permute.xlu0 %959 }
 0x2e0   :  { %1340 = vmatprep.mubr.msk.f32.mxu1 %vm248_vm3, %v534_v56  ;;  %v965_v56 = vpop.permute.xlu1 %964 }
 0x2e3   :  { %1341 = vmatmul.mubr.msk.f32.gmra.mrb[4].mxu1 %vm248_vm3, %v535_v57  ;;  %v922_v57 = vpop.permute.xlu0 %921 }
 0x2e4   :  { %1343 = vmatprep.mubr.msk.f32.mxu1 %vm248_vm3, %v536_v58  ;;  %v927_v58 = vpop.permute.xlu1 %926 }
 0x2e7   :  { %1344 = vmatmul.mubr.msk.f32.gmra.mrb[6].mxu1 %vm248_vm3, %v537_v59 }
 0x2e8   :  { %1346 = vmatprep.mubr.msk.f32.mxu1 %vm248_vm3, %v538_v60 }
 0x2eb   :  { %1347 = vmatmul.mubr.msk.f32.gmra.mrb[8].mxu1 %vm248_vm3, %v539_v61 }
 0x2ec   :  { %1384 = vmatprep.mubr.msk.f32.mxu1 %vm1532_vm2, %v1533_v63 }
 0x3b2   :  { %v1339_v3 = vpop.f32.mrb[2].mxu1 }
 0x3b3   :  { %v684_v5 = vadd.f32 %v1339_v3, %v556_v0  ;;  %v678_v6 = vpop.f32.mrb[3].mxu1 }
 0x3b4   :  { %v679_v7 = vadd.f32 %v678_v6, %v551_v1  ;;  %v970_v1 = vpop.permute.xlu0 %969 }
 0x3b6   :  { %v1451_v8 = vpack.c.bf16 %v684_v5, %v679_v7  ;;  %v1342_v9 = vpop.f32.mrb[4].mxu1 }
 0x3b7   :  { %v694_v10 = vadd.f32 %v1342_v9, %v566_v2  ;;  %v688_v11 = vpop.f32.mrb[5].mxu1  ;;  %v975_v2 = vpop.permute.xlu1 %974 }
 0x3b8   :  { %v689_v13 = vadd.f32 %v688_v11, %v561_v4  ;;  %1452 = vmatpush3.bf16.msra.mxu0 %v1451_v8  ;;  %v932_v3 = vpop.permute.xlu0 %931 }
 0x3b9   :  { %1453 = vmatprep.subr.bf16.mxu0 %v1531_v62 }
 0x3ba   :  { %v1454_v15 = vpack.c.bf16 %v694_v10, %v689_v13  ;;  %v1345_v16 = vpop.f32.mrb[6].mxu1 }
 0x3bb   :  { %v704_v17 = vadd.f32 %v1345_v16, %v576_v12  ;;  %v698_v18 = vpop.f32.mrb[7].mxu1  ;;  %v937_v4 = vpop.permute.xlu1 %936 }
 0x3bc   :  { %v699_v19 = vadd.f32 %v698_v18, %v571_v14  ;;  %1455 = vmatpush3.bf16.msra.mxu0 %v1454_v15  ;;  %v980_v6 = vpop.permute.xlu0 %979 }
 0x3bd   :  { %1456 = vmatprep.subr.bf16.mxu0 %v1531_v62 }
 0x3be   :  { %v1457_v21 = vpack.c.bf16 %v704_v17, %v699_v19  ;;  %v1348_v22 = vpop.f32.mrb[8].mxu1 }
 0x3bf   :  { %v714_v24 = vadd.f32 %v1348_v22, %v586_v20  ;;  %v708_v25 = vpop.f32.mrb[9].mxu1 }
 0x3c0   :  { %v709_v26 = vadd.f32 %v708_v25, %v581_v23  ;;  %1458 = vmatpush3.bf16.msra.mxu0 %v1457_v21  ;;  %v942_v22 = vpop.permute.xlu0 %941 }
 0x3c1   :  { %1459 = vmatprep.subr.bf16.mxu0 %v1531_v62 }
 0x3c2   :  { %v1460_v27 = vpack.c.bf16 %v714_v24, %v709_v26 }
 0x3c4   :  { %1461 = vmatpush3.bf16.msra.mxu0 %v1460_v27 }
 0x3c5   :  { %1474 = vmatprep.subr.bf16.mxu0 %v1531_v62 }
 0x3c7   :  { %1366 = vmatmul.mubr.msk.f32.vlgmr.msra.gmra.mrb[10].mxu0 %vm248_vm3, %v1534_v28 }
 0x3c8   :  { %1403 = vmatprep.mubr.msk.f32.mxu0 %vm1532_vm2, %v1533_v63 }
 0x49a   :  { %v799_v29 = vpop.f32.mrb[10].mxu0 }
 0x49b   :  { %v803_v30 = vmul.f32 0.015625, %v799_v29  ;;  %v1367_v32 = vpop.f32.mrb[11].mxu0 }
 0x49d   :  { %v807_v33 = vrot.slane %v803_v30, %v1795_v31 }
 0x49f   :  { %v808_v34 = vsub.f32 %v679_v7, %v807_v33  ;;  %v809_v35 = vsub.f32 %v684_v5, %v807_v33  ;;  %v810_v36 = vsub.f32 %v689_v13, %v807_v33  ;;  %v811_v37 = vsub.f32 %v694_v10, %v807_v33 }
 0x4a0   :  { %v812_v40 = vsub.f32 %v699_v19, %v807_v33  ;;  %v813_v44 = vsub.f32 %v704_v17, %v807_v33  ;;  %v814_v63 = vsub.f32 %v709_v26, %v807_v33  ;;  %v815_v48 = vsub.f32 %v714_v24, %v807_v33 }
 0x4a1   :  { %v816_v38 = vmul.f32 %v808_v34, %v808_v34  ;;  %v817_v39 = vmul.f32 %v809_v35, %v809_v35  ;;  %v818_v42 = vmul.f32 %v810_v36, %v810_v36  ;;  %v819_v43 = vmul.f32 %v811_v37, %v811_v37 }
 0x4a2   :  { %v820_v46 = vmul.f32 %v812_v40, %v812_v40  ;;  %v821_v47 = vmul.f32 %v813_v44, %v813_v44  ;;  %v822_v50 = vmul.f32 %v814_v63, %v814_v63  ;;  %v823_v51 = vmul.f32 %v815_v48, %v815_v48 }
 0x4a3   :  { %v1463_v41 = vpack.c.bf16 %v817_v39, %v816_v38  ;;  %v1466_v45 = vpack.c.bf16 %v819_v43, %v818_v42  ;;  %v990_v38 = vpop.permute.xlu0 %989 }
 0x4a4   :  { %v1469_v49 = vpack.c.bf16 %v821_v47, %v820_v46  ;;  %v1472_v52 = vpack.c.bf16 %v823_v51, %v822_v50 }
 0x4a5   :  { %1464 = vmatpush3.bf16.msra.mxu1 %v1463_v41 }
 0x4a6   :  { %1465 = vmatprep.subr.bf16.mxu1 %v1531_v62 }
 0x4a9   :  { %1467 = vmatpush3.bf16.msra.mxu1 %v1466_v45 }
 0x4aa   :  { %1468 = vmatprep.subr.bf16.mxu1 %v1531_v62 }
 0x4ad   :  { %1470 = vmatpush3.bf16.msra.mxu1 %v1469_v49  ;;  %v1018_v49 = vpop.permute.xlu0 %1017 }
 0x4ae   :  { %1471 = vmatprep.subr.bf16.mxu1 %v1531_v62 }
 0x4b1   :  { %1473 = vmatpush3.bf16.msra.mxu1 %v1472_v52 }
 0x4b4   :  { %1385 = vmatmul.mubr.msk.f32.vlgmr.msra.gmra.mrb[10].mxu1 %vm248_vm3, %v1534_v28  ;;  %v985_v28 = vpop.permute.xlu1 %984 }
 0x4b8   :  { %v947_v26 = vpop.permute.xlu1 %946 }
 0x4bc   :  { %v995_v39 = vpop.permute.xlu1 %994 }
 0x587   :  { %v890_v59 = vpop.f32.mrb[10].mxu1 }
 0x588   :  { %v894_v60 = vmul.f32 0.015625, %v890_v59  ;;  %v1386_v61 = vpop.f32.mrb[11].mxu1 }
 0x58a   :  { %v895_v0 = vadd.f32 1e-05, %v894_v60 }
 0x58c   :  { %1496 = vrsqrt.f32 %v895_v0 }
 0x596   :  { %v1497_v5 = vpop.eup %1496 }
 0x597   :  { %v900_v7 = vrot.slane %v1497_v5, %v1795_v31 }
 0x599   :  { %v901_v8 = vmul.f32 %v900_v7, %v808_v34  ;;  %v902_v9 = vmul.f32 %v900_v7, %v809_v35  ;;  %v903_v10 = vmul.f32 %v900_v7, %v810_v36  ;;  %v904_v11 = vmul.f32 %v900_v7, %v811_v37 }
 0x59a   :  { %v905_v12 = vmul.f32 %v900_v7, %v812_v40  ;;  %v906_v13 = vmul.f32 %v900_v7, %v813_v44  ;;  %v907_v20 = vmul.f32 %v900_v7, %v814_v63  ;;  %v908_v21 = vmul.f32 %v900_v7, %v815_v48  ;;  %v1013_v48 = vld [vmem:[%s1885_s9] sm:$0x1f]  ;;  %s1535_s9 = smov [#allocation2]  }
 0x59b   :  { %v949_v14 = vmul.f32 %v912_v53, %v901_v8  ;;  %v950_v15 = vmul.f32 %v917_v54, %v902_v9  ;;  %v951_v16 = vmul.f32 %v922_v57, %v903_v10  ;;  %v952_v17 = vmul.f32 %v927_v58, %v904_v11  ;;  %s1163_s15 = sshll.u32 %s1535_s9, 4  ;;  %s1164_s15 = int_to_ptr.vmem [resolvable:$true] %s1163_s15 }
 0x59c   :  { %v953_v18 = vmul.f32 %v932_v3, %v905_v12  ;;  %v954_v19 = vmul.f32 %v937_v4, %v906_v13  ;;  %v955_v32 = vmul.f32 %v942_v22, %v907_v20  ;;  %v956_v33 = vmul.f32 %v947_v26, %v908_v21  ;;  %s1506_s16 = scalar_lea.vmem %s1164_s15, 128  ;;  %p1511_p1 = scmp.lt.s32.totalorder %s1164_s15, %s1164_s15 }
 0x59d   :  { %v997_v23 = vadd.f32 %v960_v55, %v949_v14  ;;  %v998_v24 = vadd.f32 %v965_v56, %v950_v15  ;;  %v999_v25 = vadd.f32 %v970_v1, %v951_v16  ;;  %v1000_v31 = vadd.f32 %v975_v2, %v952_v17  ;;  %p1507_p0 = scmp.ne.s32.totalorder %s1164_s15, %s1506_s16  ;;  %p1512_p2 = scmp.lt.s32.totalorder %s1506_s16, %s1506_s16 }
 0x59e   :  { %v1001_v30 = vadd.f32 %v980_v6, %v953_v18  ;;  %v1002_v37 = vadd.f32 %v985_v28, %v954_v19  ;;  %v1003_v40 = vadd.f32 %v990_v38, %v955_v32  ;;  %v1004_v44 = vadd.f32 %v995_v39, %v956_v33 }
 0x59f   :  { %v1005_v27 = vmax.f32 %v997_v23, 0.0  ;;  %v1006_v29 = vmax.f32 %v998_v24, 0.0  ;;  %v1007_v35 = vmax.f32 %v999_v25, 0.0  ;;  %v1008_v36 = vmax.f32 %v1000_v31, 0.0  ;;  %p1513_p3 = por %p1512_p2, %p1511_p1 }
 0x5a0   :  { %v1009_v42 = vmax.f32 %v1001_v30, 0.0  ;;  %v1010_v43 = vmax.f32 %v1002_v37, 0.0  ;;  %v1011_v45 = vmax.f32 %v1003_v40, 0.0  ;;  %v1012_v46 = vmax.f32 %v1004_v44, 0.0 }
 0x5a1   :  { %v1475_v34 = vpack.c.bf16 %v1006_v29, %v1005_v27  ;;  %v1478_v41 = vpack.c.bf16 %v1008_v36, %v1007_v35  ;;  %p1514_p4 = pnand %p1513_p3, %p1507_p0 }
 0x5a2   :  { %v1481_v63 = vpack.c.bf16 %v1010_v43, %v1009_v42  ;;  %v1484_v47 = vpack.c.bf16 %v1012_v46, %v1011_v45 }
 0x5a3   :  { %1476 = vmatpush3.bf16.msra.mxu0 %v1475_v34 }
 0x5a4   :  { %1477 = vmatprep.subr.bf16.mxu0 %v1531_v62 }
 0x5a7   :  { %1479 = vmatpush3.bf16.msra.mxu0 %v1478_v41 }
 0x5a8   :  { %1480 = vmatprep.subr.bf16.mxu0 %v1531_v62 }
 0x5ab   :  { %1482 = vmatpush3.bf16.msra.mxu0 %v1481_v63 }
 0x5ac   :  { %1483 = vmatprep.subr.bf16.mxu0 %v1531_v62 }
 0x5af   :  { %1485 = vmatpush3.bf16.msra.mxu0 %v1484_v47 }
 0x5b2   :  { %1404 = vmatmul.mubr.msk.f32.vlgmr.msra.gmra.mrb[12].mxu0 %vm248_vm3, %v1013_v48 }
 0x685   :  { %v1089_v50 = vpop.f32.mrb[12].mxu0 }
 0x686   :  { %v1090_v51 = vadd.f32 %v1089_v50, %v1018_v49  ;;  %v1405_v52 = vpop.f32.mrb[13].mxu0 }
 0x688   :  { %v1094_v53 = vsel %vm1093_vm4, %v1090_v51, -inf  ;;  %v1119_v54 = vsel %vm1118_vm5, %v1090_v51, -inf  ;;  %1142 = vst [vmem:[#allocation2] sm:$0x1] %v1090_v51 }
 0x689   :  { %v1095_v55 = vrot.slane %v1094_v53, 4  ;;  %v1120_v56 = vrot.slane %v1119_v54, 4 }
 0x68b   :  { %v1096_v62 = vmax.f32 %v1094_v53, %v1095_v55  ;;  %v1121_v57 = vmax.f32 %v1119_v54, %v1120_v56 }
 0x68d   :  { %v1097_v58 = vrot.slane %v1096_v62, 2  ;;  %v1122_v59 = vrot.slane %v1121_v57, 2 }
 0x68f   :  { %v1098_v60 = vmax.f32 %v1096_v62, %v1097_v58  ;;  %v1123_v61 = vmax.f32 %v1121_v57, %v1122_v59 }
 0x691   :  { %v1099_v0 = vrot.slane %v1098_v60, 1  ;;  %v1124_v1 = vrot.slane %v1123_v61, 1 }
 0x693   :  { %v1100_v2 = vmax.f32 %v1098_v60, %v1099_v0  ;;  %v1125_v3 = vmax.f32 %v1123_v61, %v1124_v1 }
 0x695   :  { %v1101_v4 = vsub.f32 %v1090_v51, %v1100_v2  ;;  %v1126_v5 = vsub.f32 %v1090_v51, %v1125_v3 }
 0x697   :  { %v1102_v6 = vmul.f32 1.442695, %v1101_v4  ;;  %v1127_v7 = vmul.f32 1.442695, %v1126_v5 }
 0x699   :  { %1498 = vpow2.f32 %v1102_v6 }
 0x69a   :  { %1500 = vpow2.f32 %v1127_v7 }
 0x6a3   :  { %v1499_v28 = vpop.eup %1498 }
 0x6a4   :  { %v1501_v8 = vpop.eup %1500  ;;  %v1105_v9 = vrot.slane %v1499_v28, 1 }
 0x6a5   :  { %v1130_v10 = vrot.slane %v1501_v8, 3 }
 0x6a6   :  { %v1108_v11 = vsel %vm1107_vm6, %v1105_v9, 0.0 }
 0x6a7   :  { %v1109_v12 = vrot.slane %v1108_v11, 4  ;;  %v1132_v13 = vsel %vm1107_vm6, %v1130_v10, 0.0 }
 0x6a8   :  { %v1133_v14 = vrot.slane %v1132_v13, 4 }
 0x6a9   :  { %v1110_v15 = vadd.f32 %v1109_v12, %v1108_v11 }
 0x6aa   :  { %v1134_v16 = vadd.f32 %v1133_v14, %v1132_v13 }
 0x6ab   :  { %v1111_v17 = vrot.slane %v1110_v15, 2 }
 0x6ac   :  { %v1135_v18 = vrot.slane %v1134_v16, 2 }
 0x6ad   :  { %v1112_v19 = vadd.f32 %v1111_v17, %v1110_v15 }
 0x6ae   :  { %v1136_v20 = vadd.f32 %v1135_v18, %v1134_v16 }
 0x6af   :  { %v1113_v21 = vrot.slane %v1112_v19, 1 }
 0x6b0   :  { %v1137_v22 = vrot.slane %v1136_v20, 1 }
 0x6b1   :  { %v1114_v23 = vadd.f32 %v1113_v21, %v1112_v19 }
 0x6b2   :  { %v1138_v24 = vadd.f32 %v1137_v22, %v1136_v20 }
 0x6b3   :  { %1502 = vlog2.f32 %v1114_v23 }
 0x6b4   :  { %1504 = vlog2.f32 %v1138_v24 }
 0x6bd   :  { %v1503_v25 = vpop.eup %1502 }
 0x6be   :  { %v1505_v31 = vpop.eup %1504  ;;  %v1116_v26 = vmul.f32 0.6931472, %v1503_v25 }
 0x6bf   :  { %v1140_v27 = vmul.f32 0.6931472, %v1505_v31 }
 0x6c0   :  { %v1117_v30 = vsub.f32 %v1101_v4, %v1116_v26 }
 0x6c1   :  { %v1141_v29 = vsub.f32 %v1126_v5, %v1140_v27 }
 0x6c3   :  { %v1144_v32 = vrot.slane %v1141_v29, 2  ;;  %v1148_v33 = vrot.slane %v1141_v29, 3  ;;  %v1152_v34 = vrot.slane %v1141_v29, 1 }
 0x6c5   :  { %v1146_v35 = vadd.f32 %v1144_v32, %v1117_v30  ;;  %v1150_v36 = vadd.f32 %v1148_v33, %v1117_v30  ;;  %v1154_v37 = vadd.f32 %v1152_v34, %v1117_v30 }
 0x6c7   :  { %1147 = vst [vmem:[#allocation2] sm:$0x2] %v1146_v35  ;;  %1151 = vst [vmem:[#allocation2 + $0x1] sm:$0x2] %v1150_v36 }
 0x6c8   :  { %1155 = vst [vmem:[#allocation2 + $0x1] sm:$0x4] %v1154_v37  ;;  %1156 = vst [vmem:[#allocation2 + $0x2] sm:$0x4] %v1146_v35 }
 0x6c9   :  { %1517 = shalt.err (!%p1514_p4)
}
 0x6ca   :  { %s1518_s19 = scalar_lea.hbm %s1887_s11, 128 }
 0x6cb   :  { %p1519_p5 = scmp.ne.s32.totalorder %s1887_s11, %s1518_s19  ;;  %p1522_p6 = scmp.lt.u32.totalorder %s1518_s19, %s1887_s11 }
 0x6cd   :  { %p1524_p7 = pnand %p1522_p6, %p1519_p5 }
 0x6cf   :  { %1527 = shalt.err (!%p1524_p7)
}
 0x6d0   :  { %1166 = dma.vmem_to_hbm [thread:$0]  %s1164_s15, 128, %s1887_s11, [#allocation3]  }
 0x6d1   :  { %1528 = dma.done.wait [#allocation3], 128  }
 0x6d2   :  { %1529 = vsyncadd [#allocation3], 4294967168 }
 0x6d3   :  { %1170 = vsyncpa [#allocation3], 1 }

</bundles_post_ra>
